<compile_context>
chip_gen: v6e
topology: v6e:2x2x1
jax: 0.10.0
libtpu: 0.0.40
codegen_flags: <defaults>
</compile_context>

<pallas_src>
import numpy as np
import jax
import jax.numpy as jnp
from jax.experimental import pallas as pl
from jax.experimental.pallas import tpu as pltpu


def hierarchy_gcn_kernel(h_ref, adj_ref, bias_ref, gw_ref, gb_ref, o_ref):
    """Single invocation over the whole (small) problem.

    h_ref    : (N, B*D)    node-major slab, h_slab[n, b*D+d] = h[b, n, d]
    adj_ref  : (2N, N)     [adj_in ; adj_out] stacked on sublanes
    bias_ref : (2N, B*D)   [bias_in ; bias_out], pre-tiled across the batch
    gw_ref   : (B*D, 3B)   block-diagonal gate weights [in | out | loop],
                           gw[b*D+d, g*B+b] = w_g[d]
    gb_ref   : (N, 3B)     gate biases per (node, batch, gate); loop block = 0
    o_ref    : (N, B*D)
    """
    N, BD = h_ref.shape
    threeB = gw_ref.shape[1]
    B = threeB // 3
    D = BD // B

    h = h_ref[...].astype(jnp.float32)

    # One MXU push for both arcs (in + out), covering the whole batch.
    arc = jnp.dot(adj_ref[...].astype(jnp.float32), h,
                  preferred_element_type=jnp.float32) \
          + bias_ref[...].astype(jnp.float32)                       # (2N, B*D)

    # One MXU push for the per-(node, batch, gate) scalar logits.
    glog = jnp.dot(h, gw_ref[...].astype(jnp.float32),
                   preferred_element_type=jnp.float32) \
           + gb_ref[...].astype(jnp.float32)                        # (N, 3B)
    gates = jax.nn.sigmoid(glog)                                    # tiny EUP work

    # Broadcast each (node, batch, gate) scalar across its D feature lanes via
    # a constant 0/1 matmul -> lane-dense (N, 3*B*D).  The broadcast matrix is
    # built in-kernel from iotas, so it costs no HBM traffic.
    row = jax.lax.broadcasted_iota(jnp.int32, (threeB, 3 * BD), 0)
    col = jax.lax.broadcasted_iota(jnp.int32, (threeB, 3 * BD), 1)
    bmat = ((col >= row * D) & (col < (row + 1) * D)).astype(jnp.float32)
    gates_full = jnp.dot(gates, bmat,
                         preferred_element_type=jnp.float32)        # (N, 3*B*D)

    msg = (arc[:N] * gates_full[:, :BD]            # in-arc  (from children)
           + arc[N:] * gates_full[:, BD:2 * BD]    # out-arc (from parents)
           + h * gates_full[:, 2 * BD:])           # self loop
    # TODO(synk): dropout is identity in eval mode; training-time dropout not modeled.
    o_ref[...] = jnp.maximum(msg, 0.0).astype(o_ref.dtype)


def hierarchy_gcn(h, adj_in, bias_in, gw_in, gb_in,
                  adj_out, bias_out, gw_out, gb_out, loop_gw):
    B, N, D = h.shape
    BD = B * D
    dt = h.dtype

    # ---- wrapper-side layout plumbing (plain XLA ops, outside the kernel) ----
    # Fold the batch into the lane dimension: (B, N, D) -> (N, B*D).
    h_slab = jnp.transpose(h, (1, 0, 2)).reshape(N, BD)

    # Stack the two adjacencies so both arcs are a single matmul.
    adj_stack = jnp.concatenate([adj_in, adj_out], axis=0)               # (2N, N)
    bias_stack = jnp.concatenate([jnp.tile(bias_in, (1, B)),
                                  jnp.tile(bias_out, (1, B))], axis=0)   # (2N, B*D)

    # Block-diagonal gate weights over the batch: gw_blk[b*D+d, g*B+b] = w_g[d].
    # Only (B*D, 3B) — the per-feature broadcast happens in-kernel, not here.
    eye_b = jnp.eye(B, dtype=dt)
    gw_blk = jnp.concatenate([jnp.kron(eye_b, gw_in),
                              jnp.kron(eye_b, gw_out),
                              jnp.kron(eye_b, loop_gw)], axis=1)         # (B*D, 3B)
    gb_blk = jnp.concatenate([jnp.tile(gb_in, (1, B)),
                              jnp.tile(gb_out, (1, B)),
                              jnp.zeros((N, B), dt)], axis=1)            # (N, 3B)

    vmem = pl.BlockSpec(memory_space=pltpu.MemorySpace.VMEM)
    out_slab = pl.pallas_call(
        hierarchy_gcn_kernel,
        out_shape=jax.ShapeDtypeStruct((N, BD), dt),
        in_specs=[vmem] * 5,
        out_specs=vmem,
    )(h_slab, adj_stack, bias_stack, gw_blk, gb_blk)

    # Back to the module's (B, N, D) layout.
    return jnp.transpose(out_slab.reshape(N, B, D), (1, 0, 2))


def reference_gcn(h, adj_in, bias_in, gw_in, gb_in,
                  adj_out, bias_out, gw_out, gb_out, loop_gw):
    h = h.astype(jnp.float32)
    in_msg = (jnp.einsum('pc,bcd->bpd', adj_in, h) + bias_in) \
             * jax.nn.sigmoid(h @ gw_in + gb_in)
    out_msg = (jnp.einsum('pc,bcd->bpd', adj_out, h) + bias_out) \
              * jax.nn.sigmoid(h @ gw_out + gb_out)
    loop_msg = h * jax.nn.sigmoid(h @ loop_gw)
    return jnp.maximum(in_msg + out_msg + loop_msg, 0.0)


def build_hierarchy(num_labels):
    """Deterministic toy hierarchy matching StructureEncoder's adjacency build:
    node_prob_from_child[parent, child] = 1.0,
    node_prob_from_parent[child, parent] = P(child | parent)."""
    # tree: 0 -> {2,3,4},  1 -> {5,6,7}; root (-1) children 0,1 are skipped
    edges = [(0, 2), (0, 3), (0, 4), (1, 5), (1, 6), (1, 7)]
    in_mat = np.zeros((num_labels, num_labels), np.float32)   # from child
    out_mat = np.zeros((num_labels, num_labels), np.float32)  # from parent
    child_count = {}
    for p, _ in edges:
        child_count[p] = child_count.get(p, 0) + 1
    for p, c in edges:
        in_mat[p, c] = 1.0
        out_mat[c, p] = 1.0 / child_count[p]
    return jnp.asarray(in_mat), jnp.asarray(out_mat)


if __name__ == "__main__":
    B, N, D = 2, 8, 32     # batch, num labels, structure-encoder node dimension

    key = jax.random.PRNGKey(0)
    keys = jax.random.split(key, 8)
    h = jax.random.normal(keys[0], (B, N, D), jnp.float32)

    adj_in, adj_out = build_hierarchy(N)
    bias_in = jax.random.normal(keys[1], (N, D), jnp.float32) * 0.1
    gw_in = jax.random.normal(keys[2], (D, 1), jnp.float32) * 0.1
    gb_in = jax.random.normal(keys[3], (N, 1), jnp.float32) * 0.1
    bias_out = jax.random.normal(keys[4], (N, D), jnp.float32) * 0.1
    gw_out = jax.random.normal(keys[5], (D, 1), jnp.float32) * 0.1
    gb_out = jax.random.normal(keys[6], (N, 1), jnp.float32) * 0.1
    loop_gw = jax.random.normal(keys[7], (D, 1), jnp.float32) * 0.1

    out = hierarchy_gcn(h, adj_in, bias_in, gw_in, gb_in,
                        adj_out, bias_out, gw_out, gb_out, loop_gw)
    out = jax.block_until_ready(out)

    ref = reference_gcn(h, adj_in, bias_in, gw_in, gb_in,
                        adj_out, bias_out, gw_out, gb_out, loop_gw)
    np.testing.assert_allclose(np.asarray(out), np.asarray(ref),
                               rtol=1e-5, atol=1e-5)
    print("KERNEL_OK")
</pallas_src>

<mosaic_0001>
module attributes {stable_mosaic.version = 11 : i64} {
  func.func @hierarchy_gcn_kernel(%arg0: memref<8x64xf32, #tpu.memory_space<vmem>>, %arg1: memref<16x8xf32, #tpu.memory_space<vmem>>, %arg2: memref<16x64xf32, #tpu.memory_space<vmem>>, %arg3: memref<64x6xf32, #tpu.memory_space<vmem>>, %arg4: memref<8x6xf32, #tpu.memory_space<vmem>>, %arg5: memref<8x64xf32, #tpu.memory_space<vmem>>) attributes {dimension_semantics = [], scalar_prefetch = 0 : i64, scratch_operands = 0 : i64, tpu.core_type = #tpu.core_type<tc>} {
    %c0 = arith.constant 0 : index
    %c0_0 = arith.constant 0 : index
    %0 = vector.load %arg0[%c0, %c0_0] : memref<8x64xf32, #tpu.memory_space<vmem>>, vector<8x64xf32>
    %c0_1 = arith.constant 0 : index
    %c0_2 = arith.constant 0 : index
    %1 = vector.load %arg1[%c0_1, %c0_2] : memref<16x8xf32, #tpu.memory_space<vmem>>, vector<16x8xf32>
    %cst = arith.constant dense<0.000000e+00> : vector<16x64xf32>
    %2 = tpu.matmul %1, %0, %cst {dimension_numbers = #tpu.dot_dimension_numbers<[1], [0], [0], [1], [0, 0, 1, 1], [], []>} : vector<16x8xf32>, vector<8x64xf32>, vector<16x64xf32> -> vector<16x64xf32>
    %c0_3 = arith.constant 0 : index
    %c0_4 = arith.constant 0 : index
    %3 = vector.load %arg2[%c0_3, %c0_4] : memref<16x64xf32, #tpu.memory_space<vmem>>, vector<16x64xf32>
    %4 = arith.addf %2, %3 : vector<16x64xf32>
    %c0_5 = arith.constant 0 : index
    %c0_6 = arith.constant 0 : index
    %5 = vector.load %arg3[%c0_5, %c0_6] : memref<64x6xf32, #tpu.memory_space<vmem>>, vector<64x6xf32>
    %cst_7 = arith.constant dense<0.000000e+00> : vector<8x6xf32>
    %6 = tpu.matmul %0, %5, %cst_7 {dimension_numbers = #tpu.dot_dimension_numbers<[1], [0], [0], [1], [0, 0, 1, 1], [], []>} : vector<8x64xf32>, vector<64x6xf32>, vector<8x6xf32> -> vector<8x6xf32>
    %c0_8 = arith.constant 0 : index
    %c0_9 = arith.constant 0 : index
    %7 = vector.load %arg4[%c0_8, %c0_9] : memref<8x6xf32, #tpu.memory_space<vmem>>, vector<8x6xf32>
    %8 = arith.addf %6, %7 : vector<8x6xf32>
    %9 = arith.negf %8 : vector<8x6xf32>
    %10 = math.exp %9 : vector<8x6xf32>
    %cst_10 = arith.constant 1.000000e+00 : f32
    %11 = vector.broadcast %cst_10 : f32 to vector<8x6xf32>
    %12 = arith.addf %11, %10 : vector<8x6xf32>
    %13 = arith.divf %11, %12 : vector<8x6xf32>
    %14 = tpu.iota {dimensions = array<i32: 0>} : vector<6x192xi32>
    %15 = tpu.iota {dimensions = array<i32: 1>} : vector<6x192xi32>
    %c32_i32 = arith.constant 32 : i32
    %16 = vector.broadcast %c32_i32 : i32 to vector<6x192xi32>
    %17 = arith.muli %14, %16 : vector<6x192xi32>
    %18 = arith.cmpi sge, %15, %17 : vector<6x192xi32>
    %c1_i32 = arith.constant 1 : i32
    %19 = vector.broadcast %c1_i32 : i32 to vector<6x192xi32>
    %20 = arith.addi %14, %19 : vector<6x192xi32>
    %c32_i32_11 = arith.constant 32 : i32
    %21 = vector.broadcast %c32_i32_11 : i32 to vector<6x192xi32>
    %22 = arith.muli %20, %21 : vector<6x192xi32>
    %23 = arith.cmpi slt, %15, %22 : vector<6x192xi32>
    %24 = arith.andi %18, %23 : vector<6x192xi1>
    %25 = arith.extui %24 : vector<6x192xi1> to vector<6x192xi32>
    %26 = arith.sitofp %25 : vector<6x192xi32> to vector<6x192xf32>
    %cst_12 = arith.constant dense<0.000000e+00> : vector<8x192xf32>
    %27 = tpu.matmul %13, %26, %cst_12 {dimension_numbers = #tpu.dot_dimension_numbers<[1], [0], [0], [1], [0, 0, 1, 1], [], []>} : vector<8x6xf32>, vector<6x192xf32>, vector<8x192xf32> -> vector<8x192xf32>
    %28 = vector.extract_strided_slice %4 {offsets = [0, 0], sizes = [8, 64], strides = [1, 1]} : vector<16x64xf32> to vector<8x64xf32>
    %29 = vector.extract_strided_slice %27 {offsets = [0, 0], sizes = [8, 64], strides = [1, 1]} : vector<8x192xf32> to vector<8x64xf32>
    %30 = arith.mulf %28, %29 : vector<8x64xf32>
    %31 = vector.extract_strided_slice %4 {offsets = [8, 0], sizes = [8, 64], strides = [1, 1]} : vector<16x64xf32> to vector<8x64xf32>
    %32 = vector.extract_strided_slice %27 {offsets = [0, 64], sizes = [8, 64], strides = [1, 1]} : vector<8x192xf32> to vector<8x64xf32>
    %33 = arith.mulf %31, %32 : vector<8x64xf32>
    %34 = arith.addf %30, %33 : vector<8x64xf32>
    %35 = vector.extract_strided_slice %27 {offsets = [0, 128], sizes = [8, 64], strides = [1, 1]} : vector<8x192xf32> to vector<8x64xf32>
    %36 = arith.mulf %0, %35 : vector<8x64xf32>
    %37 = arith.addf %34, %36 : vector<8x64xf32>
    %cst_13 = arith.constant 0.000000e+00 : f32
    %38 = vector.broadcast %cst_13 : f32 to vector<8x64xf32>
    %39 = arith.maximumf %37, %38 : vector<8x64xf32>
    %c0_14 = arith.constant 0 : index
    %c0_15 = arith.constant 0 : index
    %40 = vector.load %arg5[%c0_14, %c0_15] : memref<8x64xf32, #tpu.memory_space<vmem>>, vector<8x64xf32>
    tpu.vector_store %arg5[%c0_14, %c0_15], %39 {strides = array<i32>} : memref<8x64xf32, #tpu.memory_space<vmem>>, vector<8x64xf32>,
    return
  }
}

</mosaic_0001>

<bundles_post_ra>
// kernel: tpu_custom_call.1
= control target key start
LH: loop header
LB: loop body
LE: loop exit
PB: predicated region body
PF: predicated region fallthrough
CT: control target
= control target key end

     0   :  { %v397_v1 = vmov 0.0   ;;  %vm398_vm0 = vmmov 0   ;;  %s484_s0 = inlined_call_operand.vmem [shape: f32[8,64], index: 0, kind: input, shape index: {}]   ;;  %s485_s1 = inlined_call_operand.vmem [shape: f32[16,8], index: 1, kind: input, shape index: {}]   ;;  %s486_s2 = inlined_call_operand.vmem [shape: f32[16,64], index: 2, kind: input, shape index: {}]   ;;  %s487_s3 = inlined_call_operand.vmem [shape: f32[64,6], index: 3, kind: input, shape index: {}]   ;;  %s488_s4 = inlined_call_operand.vmem [shape: f32[8,6], index: 4, kind: input, shape index: {}]   ;;  %s489_s5 = inlined_call_operand.hbm [shape: f32[8,64], index: 5, kind: output, shape index: {}]  }
   0x1   :  { %v115_v0 = vld [vmem:[%s487_s3 + $0x38] sm:$0xff]  ;;  %348 = vmatprep.subr.mxu1 %v397_v1  ;;  %v114_v2 = vld [vmem:[%s487_s3 + $0x30] sm:$0xff]  ;;  %364 = vmatprep.mubr.msk.f32.mxu1 %vm398_vm0, %v397_v1  ;;  %v440_v3 = vld [vmem:[%s484_s0] sm:$0xff] }
   0x2   :  { %349 = vmatpush3.msra.mxu1 %v115_v0  ;;  %v113_v4 = vld [vmem:[%s487_s3 + $0x28] sm:$0xff]  ;;  %343 = vmatprep.subr.mxu0 %v440_v3 }
   0x3   :  { %350 = vmatprep.subr.mxu1 %v397_v1 }
   0x4   :  { %10 = vsyncpa [#allocation3], 0  ;;  %351 = vmatpush3.msra.mxu1 %v114_v2  ;;  %344 = vmatpush3.msra.mxu0 %v440_v3  ;;  %v112_v5 = vld [vmem:[%s487_s3 + $0x20] sm:$0xff]  ;;  %v111_v6 = vld [vmem:[%s487_s3 + $0x18] sm:$0xff]  ;;  %vm117_vm1 = vcmask 523264   ;;  %vm26_vm2 = vcmask 64512   ;;  %v197_v12 = vlaneseq }
   0x5   :  { %352 = vmatprep.subr.mxu1 %v397_v1  ;;  %v110_v7 = vld [vmem:[%s487_s3 + $0x10] sm:$0xff]  ;;  %v109_v8 = vld [vmem:[%s487_s3 + $0x8] sm:$0xff]  ;;  %v108_v9 = vld [vmem:[%s487_s3] sm:$0xff]  ;;  %vm219_vm6 = vcmask 1045504   ;;  %vm215_vm10 = vcmask 48128   ;;  %s399_s14 = smov 64  }
   0x6   :  { %353 = vmatpush3.msra.mxu1 %v113_v4  ;;  %v22_v10 = vld [vmem:[%s485_s1] sm:$0xff]  ;;  %v23_v11 = vld [vmem:[%s485_s1 + $0x8] sm:$0xff]  ;;  %v198_v13 = vshrl.u32 %v197_v12, 7  ;;  %v200_v14 = vand.u32 127, %v197_v12  ;;  %s400_s18 = smov [#allocation2]  }
   0x7   :  { %354 = vmatprep.subr.mxu1 %v397_v1  ;;  %345 = vmatprep.mubr.msk.f32.mxu0 %vm26_vm2, %v22_v10  ;;  %v116_v21 = vld [vmem:[%s488_s4] sm:$0xff]  ;;  %v25_v32 = vld [vmem:[%s486_s2 + $0x8] sm:$0xff]  ;;  %s314_s19 = sshll.u32 %s400_s18, 4  ;;  %s315_s19 = int_to_ptr.vmem [resolvable:$true] %s314_s19 }
   0x8   :  { %355 = vmatpush3.msra.mxu1 %v112_v5  ;;  %346 = vmatmul.mubr.msk.f32.vlgmr.msra.gmra.mxu0 %vm26_vm2, %v23_v11  ;;  %v201_v15 = vadd.s32 128, %v200_v14  ;;  %v202_v16 = vmul.u32 32, %v198_v13  ;;  %v205_v17 = vadd.s32 1, %v198_v13  ;;  %v24_v33 = vld [vmem:[%s486_s2] sm:$0xff]  ;;  %s375_s20 = scalar_lea.vmem %s315_s19, 128  ;;  %p380_p1 = scmp.lt.s32.totalorder %s315_s19, %s315_s19 }
   0x9   :  { %356 = vmatprep.subr.mxu1 %v397_v1  ;;  %290 = vmatprep.mubr.f32.mxu0 %v397_v1  ;;  %p376_p0 = scmp.ne.s32.totalorder %s315_s19, %s375_s20  ;;  %p381_p2 = scmp.lt.s32.totalorder %s375_s20, %s375_s20 }
   0xa   :  { %357 = vmatpush3.msra.mxu1 %v111_v6  ;;  %vm204_vm3 = vcmp.ge.s32.totalorder %v201_v15, %v202_v16  ;;  %v206_v18 = vmul.u32 32, %v205_v17  ;;  %vm203_vm4 = vcmp.ge.s32.totalorder %v200_v14, %v202_v16 }
   0xb   :  { %358 = vmatprep.subr.mxu1 %v397_v1  ;;  %p382_p3 = por %p381_p2, %p380_p1 }
   0xc   :  { %359 = vmatpush3.msra.mxu1 %v110_v7  ;;  %vm208_vm5 = vcmp.lt.s32.totalorder %v201_v15, %v206_v18  ;;  %vm207_vm7 = vcmp.lt.s32.totalorder %v200_v14, %v206_v18 }
   0xd   :  { %360 = vmatprep.subr.mxu1 %v397_v1  ;;  %vm210_vm8 = vmand %vm204_vm3, %vm208_vm5  ;;  %p383_p4 = pnand %p382_p3, %p376_p0 }
   0xe   :  { %361 = vmatpush3.msra.mxu1 %v109_v8  ;;  %v327_v19 = vsel %vm210_vm8, 1.0, %v397_v1  ;;  %vm209_vm9 = vmand %vm203_vm4, %vm207_vm7 }
   0xf   :  { %362 = vmatprep.subr.mxu1 %v397_v1  ;;  %328 = vmatprep.subr.msk.mxu0 %vm219_vm6, %v327_v19  ;;  %v326_v20 = vsel %vm209_vm9, 1.0, %v397_v1 }
  0x10   :  { %363 = vmatpush3.msra.mxu1 %v108_v9  ;;  %329 = vmatpush1.msk.msra.mxu0 %vm219_vm6, %v326_v20 }
  0x11   :  { %365 = vmatmul.mubr.msk.f32.vlgmr.msra.gmra.mxu1 %vm117_vm1, %v440_v3 }
  0xc8   :  { %v347_v29 = vpop.f32.mrf.mxu0 }
  0xc9   :  { %v105_v34 = vadd.f32 %v347_v29, %v25_v32 }
  0xca   :  { %v99_v30 = vpop.f32.mrf.mxu0 }
  0xcb   :  { %v100_v35 = vadd.f32 %v99_v30, %v24_v33 }
  0xd1   :  { %v187_v22 = vpop.f32.mrf.mxu1 }
  0xd2   :  { %v188_v23 = vadd.f32 %v187_v22, %v116_v21 }
  0xd3   :  { %v366_v24 = vpop.f32.mrf.mxu1 }
  0xd4   :  { %v325_v25 = vmul.f32 -1.442695, %v188_v23 }
  0xd6   :  { %371 = vpow2.f32 %v325_v25 }
  0xe3   :  { %v372_v26 = vpop.eup %371 }
  0xe4   :  { %v194_v27 = vadd.f32 1.0, %v372_v26 }
  0xe6   :  { %373 = vrcp.f32 %v194_v27 }
  0xf3   :  { %v374_v28 = vpop.eup %373 }
  0xf4   :  { %330 = vmatmul.mubr.msk.f32.vlgmr.msra.gmra.mxu0 %vm215_vm10, %v374_v28 }
 0x1b4   :  { %v292_v31 = vpop.f32.mrf.mxu0 }
 0x1b5   :  { %299 = vrot.lane.b32.xlu0 %v292_v31, %s399_s14  ;;  %v297_v38 = vmul.f32 %v292_v31, %v100_v35 }
 0x1b6   :  { %v294_v36 = vpop.f32.mrf.mxu0 }
 0x1b7   :  { %v304_v40 = vmul.f32 %v294_v36, %v440_v3 }
 0x227   :  { %v300_v37 = vpop.permute.xlu0 %299 }
 0x228   :  { %v302_v39 = vmul.f32 %v300_v37, %v105_v34 }
 0x22a   :  { %v303_v41 = vadd.f32 %v302_v39, %v297_v38 }
 0x22c   :  { %v305_v42 = vadd.f32 %v304_v40, %v303_v41 }
 0x22e   :  { %v306_v43 = vmax.f32 %v305_v42, 0.0 }
 0x230   :  { %307 = vst.msk [vmem:[#allocation2] sm:$0xff] %vm117_vm1, %v306_v43 }
 0x231   :  { %386 = shalt.err (!%p383_p4)
}
 0x232   :  { %317 = dma.vmem_to_hbm [thread:$0]  %s315_s19, 128, %s489_s5, [#allocation3]  }
 0x233   :  { %395 = dma.done.wait [#allocation3], 128  }
 0x234   :  { %396 = vsyncadd [#allocation3], 4294967168 }
 0x235   :  { %321 = vsyncpa [#allocation3], 1 }

</bundles_post_ra>
